<compile_context>
chip_gen: v6e
topology: v6e:2x2x1
jax: 0.10.0
libtpu: 0.0.40
codegen_flags: <defaults>
</compile_context>

<pallas_src>
import functools

import jax
import jax.numpy as jnp
from jax import lax
from jax.experimental import pallas as pl
from jax.experimental.pallas import tpu as pltpu


def _value_head_kernel(b_ref, x_ref, w_ref, o_ref):
    # b_ref: SMEM (1,)            float32 bias
    # x_ref: VMEM (TM, F)         input tile (native dtype)
    # w_ref: VMEM (1, F)          weight row (out_features == 1)
    # o_ref: VMEM (1, 1, TM)      lane-dense output tile
    acc = lax.dot_general(
        w_ref[...], x_ref[...],
        dimension_numbers=(((1,), (1,)), ((), ())),   # contract over F
        preferred_element_type=jnp.float32,
    )                                                 # (1, TM) f32 on the MXU
    o_ref[0] = (acc + b_ref[0]).astype(o_ref.dtype)


def _pick_block_m(n, f, dtype):
    """Largest row tile that fits a conservative, generation-safe VMEM budget."""
    itemsize = jnp.dtype(dtype).itemsize
    # Minimum sublane multiple per dtype packing: 8 (f32), 16 (bf16), 32 (int8/fp8).
    sub = max(8, 32 // itemsize)
    # Budget for the double-buffered x tile (fits v5e/v6e/v7x scoped VMEM easily).
    x_budget = 8 * 1024 * 1024
    bm = x_budget // (2 * f * itemsize)
    bm = max(sub, min(bm, 2048))
    # Keep multi-tile runs lane-dense / well-aligned.
    bm = max((bm // 128) * 128, sub)
    # Never make the tile bigger than the (sublane-rounded) problem.
    n_up = pl.cdiv(n, sub) * sub
    bm = min(bm, n_up)
    bm = max((bm // sub) * sub, sub)
    return int(bm)


@functools.partial(jax.jit, static_argnames=("block_m",))
def state_value_head(x, weight, bias, *, block_m=None):
    """x: (..., F); weight: (1, F); bias: (1,). Returns shape x.shape[:-1]."""
    orig_shape = x.shape
    f = orig_shape[-1]
    x2 = x.reshape(-1, f)
    n = x2.shape[0]

    if block_m is None:
        block_m = _pick_block_m(n, f, x2.dtype)
    num_tiles = pl.cdiv(n, block_m)

    w = weight.reshape(1, f).astype(x2.dtype)     # feed MXU in native dtype
    b = bias.reshape(1).astype(jnp.float32)       # SMEM scalars are 32-bit

    out = pl.pallas_call(
        _value_head_kernel,
        out_shape=jax.ShapeDtypeStruct((num_tiles, 1, block_m), x.dtype),
        grid=(num_tiles,),
        in_specs=[
            pl.BlockSpec(memory_space=pltpu.MemorySpace.SMEM),    # bias
            pl.BlockSpec((block_m, f), lambda i: (i, 0)),         # x row tile
            pl.BlockSpec((1, f), lambda i: (0, 0)),               # weight row
        ],
        out_specs=pl.BlockSpec((1, 1, block_m), lambda i: (i, 0, 0)),
        compiler_params=pltpu.CompilerParams(
            dimension_semantics=("parallel",),
            vmem_limit_bytes=32 * 1024 * 1024,
        ),
    )(b, x2, w)

    out = out.reshape(-1)[:n]                     # drop tail padding, squeeze(-1)
    return out.reshape(orig_shape[:-1])


def init_state_value_head_params(key, in_features, dtype=jnp.float32):
    """Deterministic replica of normalized_columns_initializer_(std=1.0) + zero bias."""
    w = jax.random.normal(key, (1, in_features), dtype=jnp.float32)
    w = w * (1.0 / jnp.sqrt(jnp.sum(w * w, axis=1, keepdims=True)))
    b = jnp.zeros((1,), dtype=jnp.float32)
    return w.astype(dtype), b.astype(dtype)


if __name__ == "__main__":
    key = jax.random.PRNGKey(0)
    k_w, k_x = jax.random.split(key)

    batch, seq, in_features = 2, 8, 32
    weight, bias = init_state_value_head_params(k_w, in_features)
    x = jax.random.normal(k_x, (batch, seq, in_features), dtype=jnp.float32)

    y = state_value_head(x, weight, bias)
    y = jax.block_until_ready(y)

    # Reference in plain JAX (same math as torch Linear(F, 1) + squeeze(-1)).
    y_ref = x @ weight[0] + bias[0]
    assert y.shape == (batch, seq), y.shape
    assert jnp.allclose(y, y_ref, atol=1e-4, rtol=1e-4), "mismatch vs reference"

    print("KERNEL_OK")
</pallas_src>

<mosaic_0001>
module attributes {stable_mosaic.version = 11 : i64} {
  func.func @_value_head_kernel(%arg0: i32, %arg1: memref<1xf32, #tpu.memory_space<smem>>, %arg2: memref<16x32xf32, #tpu.memory_space<vmem>>, %arg3: memref<1x32xf32, #tpu.memory_space<vmem>>, %arg4: memref<1x1x16xf32, #tpu.memory_space<vmem>>) attributes {dimension_semantics = [#tpu.dimension_semantics<parallel>], iteration_bounds = array<i64: 1>, scalar_prefetch = 0 : i64, scratch_operands = 0 : i64, tpu.core_type = #tpu.core_type<tc>, window_params = [{transform_indices = @transform_0, window_bounds = array<i64: 1>}, {transform_indices = @transform_1, window_bounds = array<i64: 16, 32>}, {pipeline_mode = #tpu.pipeline_mode<synchronous>, transform_indices = @transform_2, window_bounds = array<i64: 1, 32>}, {transform_indices = @transform_3, window_bounds = array<i64: 1, 1, 16>}]} {
    %c0 = arith.constant 0 : index
    %c0_0 = arith.constant 0 : index
    %0 = vector.load %arg3[%c0, %c0_0] : memref<1x32xf32, #tpu.memory_space<vmem>>, vector<1x32xf32>
    %c0_1 = arith.constant 0 : index
    %c0_2 = arith.constant 0 : index
    %1 = vector.load %arg2[%c0_1, %c0_2] : memref<16x32xf32, #tpu.memory_space<vmem>>, vector<16x32xf32>
    %cst = arith.constant dense<0.000000e+00> : vector<1x16xf32>
    %2 = tpu.matmul %0, %1, %cst {dimension_numbers = #tpu.dot_dimension_numbers<[1], [1], [0], [0], [0, 0, 1, 0], [], []>} : vector<1x32xf32>, vector<16x32xf32>, vector<1x16xf32> -> vector<1x16xf32>
    %c0_3 = arith.constant 0 : index
    %3 = memref.load %arg1[%c0_3] : memref<1xf32, #tpu.memory_space<smem>>
    %4 = vector.broadcast %3 : f32 to vector<1x16xf32>
    %5 = arith.addf %2, %4 : vector<1x16xf32>
    %c0_4 = arith.constant 0 : index
    %c0_5 = arith.constant 0 : index
    %c0_6 = arith.constant 0 : index
    %6 = vector.load %arg4[%c0_4, %c0_5, %c0_6] : memref<1x1x16xf32, #tpu.memory_space<vmem>>, vector<1x1x16xf32>
    %7 = vector.shape_cast %6 : vector<1x1x16xf32> to vector<1x16xf32>
    %8 = vector.shape_cast %5 : vector<1x16xf32> to vector<1x1x16xf32>
    tpu.vector_store %arg4[%c0_4, %c0_5, %c0_6], %8 {strides = array<i32>} : memref<1x1x16xf32, #tpu.memory_space<vmem>>, vector<1x1x16xf32>,
    return
  }
  func.func @transform_0(%arg0: i32) -> i32 {
    %c0_i32 = arith.constant 0 : i32
    %c0_i32_0 = arith.constant 0 : i32
    return %c0_i32 : i32
  }
  func.func @transform_1(%arg0: i32) -> (i32, i32) {
    %c0_i32 = arith.constant 0 : i32
    %c0_i32_0 = arith.constant 0 : i32
    return %arg0, %c0_i32 : i32, i32
  }
  func.func @transform_2(%arg0: i32) -> (i32, i32) {
    %c0_i32 = arith.constant 0 : i32
    %c0_i32_0 = arith.constant 0 : i32
    %c0_i32_1 = arith.constant 0 : i32
    return %c0_i32, %c0_i32_0 : i32, i32
  }
  func.func @transform_3(%arg0: i32) -> (i32, i32, i32) {
    %c0_i32 = arith.constant 0 : i32
    %c0_i32_0 = arith.constant 0 : i32
    %c0_i32_1 = arith.constant 0 : i32
    return %arg0, %c0_i32, %c0_i32_0 : i32, i32, i32
  }
}

</mosaic_0001>

<bundles_post_ra>
// kernel: state_value_head.1
= control target key start
LH: loop header
LB: loop body
LE: loop exit
PB: predicated region body
PF: predicated region fallthrough
CT: control target
= control target key end

     0   :  { %9 = vsyncpa [#allocation4], 0  ;;  %s161_s12 = smov [#allocation3]   ;;  %s198_s0 = inlined_call_operand.<no memory space> [shape: f32[1], index: 0, kind: input, shape index: {}]   ;;  %s199_s1 = inlined_call_operand.hbm [shape: f32[16,32], index: 1, kind: input, shape index: {}]   ;;  %s200_s2 = inlined_call_operand.vmem [shape: f32[1,32], index: 2, kind: input, shape index: {}]   ;;  %s201_s3 = inlined_call_operand.vmem [shape: f32[1,1,16], index: 3, kind: output, shape index: {}]  }
   0x1   :  { %s17_s13 = sshll.u32 %s161_s12, 4  ;;  %s18_s13 = int_to_ptr.vmem [resolvable:$true] %s17_s13 }
   0x2   :  { %s147_s14 = scalar_lea.vmem %s18_s13, 256  ;;  %p152_p1 = scmp.lt.s32.totalorder %s18_s13, %s18_s13 }
   0x3   :  { %p148_p0 = scmp.ne.s32.totalorder %s18_s13, %s147_s14  ;;  %p153_p2 = scmp.lt.s32.totalorder %s147_s14, %s147_s14 }
   0x5   :  { %p154_p3 = por %p153_p2, %p152_p1 }
   0x7   :  { %p155_p4 = pnand %p154_p3, %p148_p0 }
   0x9   :  { %158 = shalt.err (!%p155_p4)
}
   0xa   :  { %s162_s15 = smov 128   ;;  %s163_s16 = smov 8  }
   0xb   :  { %23 = dma.hbm_to_vmem [thread:$0]  %s199_s1, 256, %s18_s13, [#allocation4], %s162_s15, %s162_s15, %s163_s16  }
   0xc   :  { %159 = dma.done.wait [#allocation4], 256  }
   0xd   :  { %160 = vsyncadd [#allocation4], 4294967040  ;;  %v164_v0 = vmov 0.0   ;;  %vm165_vm0 = vmmov 0   ;;  %vm34_vm1 = vcmask 261120   ;;  %v31_v1 = vld [vmem:[#allocation3 + $0x8] sm:$0xff]  ;;  %v33_v4 = vstv %s198_s0 }
   0xe   :  { %127 = vmatprep.subr.mxu0 %v164_v0  ;;  %131 = vmatprep.mubr.msk.f32.mxu0 %vm165_vm0, %v164_v0  ;;  %v30_v2 = vld [vmem:[#allocation3] sm:$0xff]  ;;  %vm114_vm2 = vcmask 122880  }
   0xf   :  { %128 = vmatpush3.xpose.msk.msra.mxu0 %vm34_vm1, %v31_v1  ;;  %v29_v3 = vld [vmem:[%s200_s2] sm:$0x1] }
  0x10   :  { %129 = vmatprep.subr.mxu0 %v164_v0 }
  0x13   :  { %130 = vmatpush3.xpose.msk.msra.mxu0 %vm34_vm1, %v30_v2 }
  0x16   :  { %132 = vmatmul.mubr.msk.f32.vlgmr.msra.gmra.mxu0 %vm34_vm1, %v29_v3 }
  0xd6   :  { %v110_v5 = vpop.f32.mrf.mxu0 }
  0xd7   :  { %v111_v6 = vadd.f32 %v110_v5, %v33_v4 }
  0xd8   :  { %v133_v7 = vpop.f32.mrf.mxu0 }
  0xd9   :  { %115 = vst.msk [vmem:[%s201_s3] sm:$0x1] %vm114_vm2, %v111_v6 }
  0xda   :  { %120 = vsyncpa [#allocation4], 1 }

</bundles_post_ra>
